<compile_context>
chip_gen: v6e
topology: v6e:2x2x1
jax: 0.10.0
libtpu: 0.0.40
codegen_flags: <defaults>
</compile_context>

<pallas_src>
import functools
import math

import jax
import jax.numpy as jnp
from jax import lax
from jax.experimental import pallas as pl
from jax.experimental.pallas import tpu as pltpu


_INV_SQRT2 = 1.0 / math.sqrt(2.0)


def _round_up(x, m):
    return ((x + m - 1) // m) * m


def _sublane_multiple(dtype):
    # Minimum second-to-last tile dim: 8 (f32) / 16 (bf16) / 32 (int8/fp8).
    return 8 * (4 // jnp.dtype(dtype).itemsize)


def _pick_tk(H, cap):
    """Largest K tile (multiple of 128) that divides H exactly, capped at `cap`.
    Falls back to the full H (single reduction step) when no such divisor
    exists -- K is never padded, so the reduction never sees garbage."""
    if H <= cap or cap < 128:
        return H
    for cand in range(cap - cap % 128, 127, -128):
        if H % cand == 0:
            return cand
    return H


def _default_vmem_limit():
    # Generation-aware scoped-VMEM limit: ~75% of physical VMEM
    # (v5e/v6e: 128 MiB -> 96 MiB, v7x: 64 MiB -> 48 MiB), capped at 100 MiB.
    try:
        info = pltpu.get_tpu_info()
        cap = getattr(info, "vmem_capacity_bytes", None)
        if cap:
            return int(min(cap * 3 // 4, 100 * 1024 * 1024))
    except Exception:
        pass
    return 48 * 1024 * 1024


def _gelu_f32(x, approximate):
    if approximate:
        # tanh form -> transcendental routed to the EUP slot (co-issues w/ MXU).
        return jax.nn.gelu(x, approximate=True)
    # PyTorch's default nn.GELU / ACT2FN["gelu"]: exact erf form.
    return 0.5 * x * (1.0 + lax.erf(x * _INV_SQRT2))


def _intermediate_kernel(x_ref, w_ref, b_ref, o_ref, acc_ref, *, approximate):
    # x_ref: (tm, tk)   w_ref: (tk, tn)   b_ref: (1, tn) f32
    # o_ref: (tm, tn) activation dtype    acc_ref: (tm, tn) f32 scratch
    k = pl.program_id(2)

    @pl.when(k == 0)
    def _():
        acc_ref[...] = jnp.zeros_like(acc_ref)

    acc_ref[...] += jnp.dot(x_ref[...], w_ref[...],
                            preferred_element_type=jnp.float32)

    @pl.when(k == pl.num_programs(2) - 1)
    def _():
        acc = acc_ref[...] + b_ref[...].astype(jnp.float32)
        o_ref[...] = _gelu_f32(acc, approximate).astype(o_ref.dtype)


def gext_intermediate(hidden_states, weight, bias, *,
                      tm=1024, tn=512, tk_cap=2048,
                      use_bf16_matmul=True, approximate_gelu=False,
                      vmem_limit_bytes=None):
    """GELU(hidden_states @ weight.T + bias)  -- GEXTIntermediate.forward.

    hidden_states: (B, S, H); weight: (I, H) (PyTorch nn.Linear layout);
    bias: (I,).
    """
    B, S, H = hidden_states.shape
    I, H_w = weight.shape
    assert H_w == H, "weight must be (intermediate_size, hidden_size)"
    M = B * S
    out_dtype = hidden_states.dtype

    if vmem_limit_bytes is None:
        vmem_limit_bytes = _default_vmem_limit()

    # MXU-native operand dtype; accumulation / bias add / GELU stay f32.
    op_dtype = jnp.bfloat16 if use_bf16_matmul else hidden_states.dtype

    x2d = hidden_states.reshape(M, H).astype(op_dtype)
    # Pre-transpose the weight once to (K, N) = (H, I): plain (M,K)x(K,N) MXU
    # feed, no per-tile transposes inside the kernel.
    # TODO(synk): in a real model store W^T in bf16 once at param-load time
    # instead of casting/transposing per call.
    w_kn = weight.astype(op_dtype).T                       # (H, I)
    b2d = bias.astype(jnp.float32).reshape(1, I)

    sub = _sublane_multiple(op_dtype)
    assert tm % sub == 0, f"tm must be a multiple of {sub} for {op_dtype}"
    assert tn % 128 == 0, "tn must be a multiple of 128"

    tm_eff = min(tm, _round_up(M, sub))        # no full-tensor pad: ragged last
    tn_eff = tn if I >= tn else I              # blocks are handled by Pallas
    tk_eff = _pick_tk(H, tk_cap)

    m_tiles = pl.cdiv(M, tm_eff)
    n_tiles = pl.cdiv(I, tn_eff)
    k_tiles = H // tk_eff                      # exact by construction

    x_shape = (tm_eff, tk_eff)
    w_shape = (tk_eff, tn_eff)
    b_shape = (1, tn_eff)
    o_shape = (tm_eff, tn_eff)

    # Put the larger operand's tile axis on the OUTER grid axis so that, when
    # the K axis collapses to a single step, its block index is constant
    # across the inner axis (resident -> fetched from HBM exactly once).
    if M >= I:
        grid = (m_tiles, n_tiles, k_tiles)
        x_spec = pl.BlockSpec(x_shape, lambda i, j, k: (i, k))
        w_spec = pl.BlockSpec(w_shape, lambda i, j, k: (k, j))
        b_spec = pl.BlockSpec(b_shape, lambda i, j, k: (0, j))
        o_spec = pl.BlockSpec(o_shape, lambda i, j, k: (i, j))
    else:
        grid = (n_tiles, m_tiles, k_tiles)
        x_spec = pl.BlockSpec(x_shape, lambda j, i, k: (i, k))
        w_spec = pl.BlockSpec(w_shape, lambda j, i, k: (k, j))
        b_spec = pl.BlockSpec(b_shape, lambda j, i, k: (0, j))
        o_spec = pl.BlockSpec(o_shape, lambda j, i, k: (i, j))

    op_bytes = jnp.dtype(op_dtype).itemsize
    out_bytes = jnp.dtype(out_dtype).itemsize
    cost = pl.CostEstimate(
        flops=2 * M * I * H,
        transcendentals=M * I,
        bytes_accessed=(M * H * op_bytes + I * H * op_bytes + I * 4
                        + M * I * out_bytes),
    )

    kernel = functools.partial(_intermediate_kernel,
                               approximate=approximate_gelu)

    out = pl.pallas_call(
        kernel,
        out_shape=jax.ShapeDtypeStruct((M, I), out_dtype),
        grid_spec=pltpu.PrefetchScalarGridSpec(
            num_scalar_prefetch=0,
            grid=grid,
            in_specs=[x_spec, w_spec, b_spec],
            out_specs=o_spec,
            scratch_shapes=[pltpu.VMEM((tm_eff, tn_eff), jnp.float32)],
        ),
        compiler_params=pltpu.CompilerParams(
            dimension_semantics=("parallel", "parallel", "arbitrary"),
            vmem_limit_bytes=vmem_limit_bytes),
        cost_estimate=cost,
    )(x2d, w_kn, b2d)

    return out.reshape(B, S, I)


if __name__ == "__main__":
    def _ref(hs, w, b, op_dtype=None):
        # Reference matching the kernel's numerics (optional bf16 operands,
        # f32 accumulate, exact-erf GELU in f32).
        x = hs if op_dtype is None else hs.astype(op_dtype)
        wt = (w if op_dtype is None else w.astype(op_dtype)).T
        acc = jnp.dot(x.reshape(-1, x.shape[-1]), wt,
                      preferred_element_type=jnp.float32)
        acc = acc + b.astype(jnp.float32)
        out = 0.5 * acc * (1.0 + lax.erf(acc * _INV_SQRT2))
        return out.reshape(hs.shape[:-1] + (w.shape[0],)).astype(hs.dtype)

    # --- Check 1: small config implied by the module (hidden=32, inter=64).
    B, S, H, I = 2, 8, 32, 64
    key = jax.random.PRNGKey(0)
    k_x, k_w, k_b = jax.random.split(key, 3)
    hidden_states = jax.random.normal(k_x, (B, S, H), dtype=jnp.float32)
    bound = 1.0 / math.sqrt(H)
    weight = jax.random.uniform(k_w, (I, H), minval=-bound, maxval=bound,
                                dtype=jnp.float32)
    bias = jax.random.uniform(k_b, (I,), minval=-bound, maxval=bound,
                              dtype=jnp.float32)

    out = jax.block_until_ready(gext_intermediate(hidden_states, weight, bias))
    assert out.shape == (B, S, I)
    # Tight check vs a bf16-operand reference (same numerics as the kernel).
    ref_bf16 = _ref(hidden_states, weight, bias, op_dtype=jnp.bfloat16)
    assert jnp.allclose(out, ref_bf16, atol=1e-4, rtol=1e-4)
    # Loose sanity check vs the full-f32 (PyTorch-equivalent) reference.
    ref_f32 = _ref(hidden_states, weight, bias)
    assert jnp.allclose(out, ref_f32, atol=5e-2, rtol=5e-2)

    # --- Check 2: ragged M / ragged I + K-split accumulation exercised.
    B2, S2, H2, I2 = 2, 9, 256, 320     # M=18 (partial row block), ragged I
    k_x2, k_w2, k_b2 = jax.random.split(jax.random.PRNGKey(0), 3)
    hs2 = jax.random.normal(k_x2, (B2, S2, H2), dtype=jnp.float32)
    bound2 = 1.0 / math.sqrt(H2)
    w2 = jax.random.uniform(k_w2, (I2, H2), minval=-bound2, maxval=bound2,
                            dtype=jnp.float32)
    b2 = jax.random.uniform(k_b2, (I2,), minval=-bound2, maxval=bound2,
                            dtype=jnp.float32)

    out2 = jax.block_until_ready(
        gext_intermediate(hs2, w2, b2, tm=64, tn=128, tk_cap=128))
    assert out2.shape == (B2, S2, I2)
    ref2_bf16 = _ref(hs2, w2, b2, op_dtype=jnp.bfloat16)
    assert jnp.allclose(out2, ref2_bf16, atol=1e-4, rtol=1e-4)
    ref2_f32 = _ref(hs2, w2, b2)
    assert jnp.allclose(out2, ref2_f32, atol=5e-2, rtol=5e-2)

    print("KERNEL_OK")
</pallas_src>

<mosaic_0001>
module attributes {stable_mosaic.version = 11 : i64} {
  func.func @_intermediate_kernel(%arg0: i32, %arg1: i32, %arg2: i32, %arg3: memref<16x32xbf16, #tpu.memory_space<vmem>>, %arg4: memref<32x64xbf16, #tpu.memory_space<vmem>>, %arg5: memref<1x64xf32, #tpu.memory_space<vmem>>, %arg6: memref<16x64xf32, #tpu.memory_space<vmem>>, %arg7: memref<16x64xf32, #tpu.memory_space<vmem>>) attributes {dimension_semantics = [#tpu.dimension_semantics<parallel>, #tpu.dimension_semantics<parallel>, #tpu.dimension_semantics<arbitrary>], iteration_bounds = array<i64: 1, 1, 1>, scalar_prefetch = 0 : i64, scratch_operands = 1 : i64, tpu.core_type = #tpu.core_type<tc>, window_params = [{transform_indices = @transform_0, window_bounds = array<i64: 16, 32>}, {transform_indices = @transform_1, window_bounds = array<i64: 32, 64>}, {transform_indices = @transform_2, window_bounds = array<i64: 1, 64>}, {transform_indices = @transform_3, window_bounds = array<i64: 16, 64>}]} {
    %c0_i32 = arith.constant 0 : i32
    %0 = arith.cmpi eq, %arg2, %c0_i32 : i32
    %1 = arith.extui %0 : i1 to i32
    %c0_i32_0 = arith.constant 0 : i32
    %2 = arith.cmpi ne, %1, %c0_i32_0 : i32
    scf.if %2 {
      %cst_10 = arith.constant 0.000000e+00 : f32
      %12 = vector.broadcast %cst_10 : f32 to vector<16x64xf32>
      %c0_11 = arith.constant 0 : index
      %c0_12 = arith.constant 0 : index
      %13 = vector.load %arg7[%c0_11, %c0_12] : memref<16x64xf32, #tpu.memory_space<vmem>>, vector<16x64xf32>
      tpu.vector_store %arg7[%c0_11, %c0_12], %12 {strides = array<i32>} : memref<16x64xf32, #tpu.memory_space<vmem>>, vector<16x64xf32>,
    } else {
    }
    %c0 = arith.constant 0 : index
    %c0_1 = arith.constant 0 : index
    %3 = vector.load %arg7[%c0, %c0_1] : memref<16x64xf32, #tpu.memory_space<vmem>>, vector<16x64xf32>
    %c0_2 = arith.constant 0 : index
    %c0_3 = arith.constant 0 : index
    %4 = vector.load %arg3[%c0_2, %c0_3] : memref<16x32xbf16, #tpu.memory_space<vmem>>, vector<16x32xbf16>
    %c0_4 = arith.constant 0 : index
    %c0_5 = arith.constant 0 : index
    %5 = vector.load %arg4[%c0_4, %c0_5] : memref<32x64xbf16, #tpu.memory_space<vmem>>, vector<32x64xbf16>
    %cst = arith.constant dense<0.000000e+00> : vector<16x64xf32>
    %6 = tpu.matmul %4, %5, %cst {dimension_numbers = #tpu.dot_dimension_numbers<[1], [0], [0], [1], [0, 0, 1, 1], [], []>} : vector<16x32xbf16>, vector<32x64xbf16>, vector<16x64xf32> -> vector<16x64xf32>
    %7 = arith.addf %3, %6 : vector<16x64xf32>
    %c0_6 = arith.constant 0 : index
    %c0_7 = arith.constant 0 : index
    %8 = vector.load %arg7[%c0_6, %c0_7] : memref<16x64xf32, #tpu.memory_space<vmem>>, vector<16x64xf32>
    tpu.vector_store %arg7[%c0_6, %c0_7], %7 {strides = array<i32>} : memref<16x64xf32, #tpu.memory_space<vmem>>, vector<16x64xf32>,
    %c0_i32_8 = arith.constant 0 : i32
    %9 = arith.cmpi eq, %arg2, %c0_i32_8 : i32
    %10 = arith.extui %9 : i1 to i32
    %c0_i32_9 = arith.constant 0 : i32
    %11 = arith.cmpi ne, %10, %c0_i32_9 : i32
    scf.if %11 {
      %c0_10 = arith.constant 0 : index
      %c0_11 = arith.constant 0 : index
      %12 = vector.load %arg7[%c0_10, %c0_11] : memref<16x64xf32, #tpu.memory_space<vmem>>, vector<16x64xf32>
      %c0_12 = arith.constant 0 : index
      %c0_13 = arith.constant 0 : index
      %13 = vector.load %arg5[%c0_12, %c0_13] : memref<1x64xf32, #tpu.memory_space<vmem>>, vector<1x64xf32>
      %14 = vector.broadcast %13 : vector<1x64xf32> to vector<16x64xf32>
      %15 = arith.addf %12, %14 : vector<16x64xf32>
      %cst_14 = arith.constant 5.000000e-01 : f32
      %16 = vector.broadcast %cst_14 : f32 to vector<16x64xf32>
      %17 = arith.mulf %16, %15 : vector<16x64xf32>
      %cst_15 = arith.constant 0.707106769 : f32
      %18 = vector.broadcast %cst_15 : f32 to vector<16x64xf32>
      %19 = arith.mulf %15, %18 : vector<16x64xf32>
      %20 = math.erf %19 : vector<16x64xf32>
      %cst_16 = arith.constant 1.000000e+00 : f32
      %21 = vector.broadcast %cst_16 : f32 to vector<16x64xf32>
      %22 = arith.addf %21, %20 : vector<16x64xf32>
      %23 = arith.mulf %17, %22 : vector<16x64xf32>
      %c0_17 = arith.constant 0 : index
      %c0_18 = arith.constant 0 : index
      %24 = vector.load %arg6[%c0_17, %c0_18] : memref<16x64xf32, #tpu.memory_space<vmem>>, vector<16x64xf32>
      tpu.vector_store %arg6[%c0_17, %c0_18], %23 {strides = array<i32>} : memref<16x64xf32, #tpu.memory_space<vmem>>, vector<16x64xf32>,
    } else {
    }
    return
  }
  func.func @transform_0(%arg0: i32, %arg1: i32, %arg2: i32) -> (i32, i32) {
    %c0_i32 = arith.constant 0 : i32
    return %arg1, %arg2 : i32, i32
  }
  func.func @transform_1(%arg0: i32, %arg1: i32, %arg2: i32) -> (i32, i32) {
    %c0_i32 = arith.constant 0 : i32
    return %arg2, %arg0 : i32, i32
  }
  func.func @transform_2(%arg0: i32, %arg1: i32, %arg2: i32) -> (i32, i32) {
    %c0_i32 = arith.constant 0 : i32
    %c0_i32_0 = arith.constant 0 : i32
    return %c0_i32, %arg0 : i32, i32
  }
  func.func @transform_3(%arg0: i32, %arg1: i32, %arg2: i32) -> (i32, i32) {
    %c0_i32 = arith.constant 0 : i32
    return %arg1, %arg0 : i32, i32
  }
}

</mosaic_0001>

<bundles_post_ra>
// kernel: tpu_custom_call.1
= control target key start
LH: loop header
LB: loop body
LE: loop exit
PB: predicated region body
PF: predicated region fallthrough
CT: control target
= control target key end

     0   :  { %8 = vsyncpa [#allocation4], 0  ;;  %s315_s0 = inlined_call_operand.hbm [shape: bf16[16,32], index: 0, kind: input, shape index: {}]   ;;  %s316_s1 = inlined_call_operand.hbm [shape: bf16[32,64], index: 1, kind: input, shape index: {}]   ;;  %s317_s2 = inlined_call_operand.vmem [shape: f32[1,64], index: 2, kind: input, shape index: {}]   ;;  %s318_s3 = inlined_call_operand.hbm [shape: f32[16,64], index: 3, kind: output, shape index: {}]  }
   0x1   :  { %9 = vsyncpa [#allocation7], 0 }
   0x2   :  { %10 = vsyncpa [#allocation5], 0  ;;  %s268_s12 = smov [#allocation3]  }
   0x3   :  { %s16_s13 = sshll.u32 %s268_s12, 4  ;;  %s17_s13 = int_to_ptr.vmem [resolvable:$true] %s16_s13 }
   0x4   :  { %s210_s14 = scalar_lea.vmem %s17_s13, 128  ;;  %p215_p1 = scmp.lt.s32.totalorder %s17_s13, %s17_s13 }
   0x5   :  { %p211_p0 = scmp.ne.s32.totalorder %s17_s13, %s210_s14  ;;  %p216_p2 = scmp.lt.s32.totalorder %s210_s14, %s210_s14 }
   0x7   :  { %p217_p3 = por %p216_p2, %p215_p1 }
   0x9   :  { %p218_p4 = pnand %p217_p3, %p211_p0 }
   0xb   :  { %221 = shalt.err (!%p218_p4)
}
   0xc   :  { %s269_s15 = smov 64   ;;  %s270_s16 = smov 4  }
   0xd   :  { %22 = dma.hbm_to_vmem [thread:$0]  %s315_s0, 128, %s17_s13, [#allocation4], %s269_s15, %s269_s15, %s270_s16  }
   0xe   :  { %s271_s19 = smov [#allocation6]  }
   0xf   :  { %s28_s20 = sshll.u32 %s271_s19, 4  ;;  %s29_s20 = int_to_ptr.vmem [resolvable:$true] %s28_s20 }
  0x10   :  { %s230_s21 = scalar_lea.vmem %s29_s20, 256  ;;  %p235_p6 = scmp.lt.s32.totalorder %s29_s20, %s29_s20 }
  0x11   :  { %p231_p5 = scmp.ne.s32.totalorder %s29_s20, %s230_s21  ;;  %p236_p7 = scmp.lt.s32.totalorder %s230_s21, %s230_s21 }
  0x13   :  { %p237_p8 = por %p236_p7, %p235_p6 }
  0x15   :  { %p238_p9 = pnand %p237_p8, %p231_p5 }
  0x17   :  { %241 = shalt.err (!%p238_p9)
}
  0x18   :  { %34 = dma.hbm_to_vmem [thread:$0]  %s316_s1, 256, %s29_s20, [#allocation7], %s269_s15, %s269_s15, %s270_s16  }
  0x19   :  { %262 = dma.done.wait [#allocation4], 128  }
  0x1a   :  { %263 = vsyncadd [#allocation4], 4294967168 }
  0x1b   :  { %264 = dma.done.wait [#allocation7], 256  }
  0x1c   :  { %265 = vsyncadd [#allocation7], 4294967040  ;;  %vm48_vm0 = vcmask 523264   ;;  %v272_v0 = vmov 0.0   ;;  %vm273_vm1 = vmmov 0   ;;  %v195_v1 = vld [vmem:[#allocation6 + $0x8] sm:$0xff]  }
  0x1d   :  { %49 = vst.msk [vmem:[#allocation2] sm:$0xff] %vm48_vm0, %v272_v0  ;;  %50 = vst.msk [vmem:[#allocation2 + $0x8] sm:$0xff] %vm48_vm0, %v272_v0  ;;  %178 = vmatprep.subr.bf16.mxu0 %v272_v0  ;;  %182 = vmatprep.mubr.msk.bf16.mxu0 %vm273_vm1, %v272_v0  ;;  %v196_v2 = vld [vmem:[#allocation6] sm:$0xff]   ;;  %v197_v3 = vld [vmem:[#allocation3] sm:$0xff]   ;;  %vm76_vm2 = vcmask 261120   ;;  %s274_s24 = smov [#allocation8]  }
  0x1e   :  { %179 = vmatpush3.bf16.msra.mxu0 %v195_v1  ;;  %v174_v12 = vld [vmem:[%s317_s2] ss:$0 sm:$0xff]  ;;  %s157_s25 = sshll.u32 %s274_s24, 4  ;;  %s158_s25 = int_to_ptr.vmem [resolvable:$true] %s157_s25 }
  0x1f   :  { %180 = vmatprep.subr.bf16.mxu0 %v272_v0  ;;  %s242_s2 = scalar_lea.vmem %s158_s25, 256  ;;  %p247_p11 = scmp.lt.s32.totalorder %s158_s25, %s158_s25 }
  0x20   :  { %p243_p10 = scmp.ne.s32.totalorder %s158_s25, %s242_s2  ;;  %p248_p12 = scmp.lt.s32.totalorder %s242_s2, %s242_s2 }
  0x22   :  { %181 = vmatpush3.bf16.msra.mxu0 %v196_v2  ;;  %p249_p13 = por %p248_p12, %p247_p11 }
  0x24   :  { %v51_v4 = vld [vmem:[#allocation2] sm:$0xff]  ;;  %v52_v8 = vld [vmem:[#allocation2 + $0x8] sm:$0xff]  ;;  %p250_p0 = pnand %p249_p13, %p243_p10 }
  0x25   :  { %183 = vmatmul.mubr.msk.bf16.vlgmr.msra.gmra.mxu0 %vm76_vm2, %v197_v3 }
  0xe5   :  { %v114_v5 = vpop.f32.mrf.mxu0 }
  0xe6   :  { %v121_v6 = vadd.f32 %v114_v5, %v51_v4 }
  0xe7   :  { %v184_v7 = vpop.f32.mrf.mxu0 }
  0xe8   :  { %124 = vst.msk [vmem:[#allocation2] sm:$0xff] %vm48_vm0, %v121_v6 }
  0xe9   :  { %v117_v9 = vpop.f32.mrf.mxu0 }
  0xea   :  { %v122_v10 = vadd.f32 %v117_v9, %v52_v8 }
  0xeb   :  { %v185_v11 = vpop.f32.mrf.mxu0 }
  0xec   :  { %125 = vst.msk [vmem:[#allocation2 + $0x8] sm:$0xff] %vm48_vm0, %v122_v10 }
  0xef   :  { %v129_v13 = vld [vmem:[#allocation2] sm:$0xff] }
  0xf0   :  { %v138_v14 = vadd.f32 %v174_v12, %v129_v13 }
  0xf2   :  { %v142_v15 = vmul.f32 0.70710677, %v138_v14  ;;  %v140_v20 = vmul.f32 0.5, %v138_v14 }
  0xf3   :  { %v130_v16 = vld [vmem:[#allocation2 + $0x8] sm:$0xff] }
  0xf4   :  { %v139_v17 = vadd.f32 %v174_v12, %v130_v16  ;;  %198 = verf.f32 %v142_v15 }
  0xf6   :  { %v143_v18 = vmul.f32 0.70710677, %v139_v17  ;;  %v141_v24 = vmul.f32 0.5, %v139_v17 }
  0xf8   :  { %200 = verf.f32 %v143_v18 }
 0x101   :  { %v199_v19 = vpop.eup %198 }
 0x102   :  { %v146_v21 = vadd.f32 1.0, %v199_v19 }
 0x104   :  { %v148_v22 = vmul.f32 %v146_v21, %v140_v20 }
 0x105   :  { %v201_v23 = vpop.eup %200 }
 0x106   :  { %v147_v25 = vadd.f32 1.0, %v201_v23  ;;  %150 = vst.msk [vmem:[#allocation8] sm:$0xff] %vm48_vm0, %v148_v22 }
 0x108   :  { %v149_v26 = vmul.f32 %v147_v25, %v141_v24 }
 0x10a   :  { %151 = vst.msk [vmem:[#allocation8 + $0x8] sm:$0xff] %vm48_vm0, %v149_v26 }
 0x10b   :  { %253 = shalt.err (!%p250_p0)
}
 0x10c   :  { %s275_s26 = smov 128   ;;  %s276_s27 = smov 8  }
 0x10d   :  { %163 = dma.vmem_to_hbm [thread:$0]  %s158_s25, 256, %s318_s3, [#allocation5], %s275_s26, %s275_s26, %s276_s27  }
 0x10e   :  { %266 = dma.done.wait [#allocation5], 256  }
 0x10f   :  { %267 = vsyncadd [#allocation5], 4294967040 }
 0x110   :  { %167 = vsyncpa [#allocation4], 1 }
 0x111   :  { %168 = vsyncpa [#allocation7], 1 }
 0x112   :  { %169 = vsyncpa [#allocation5], 1 }

</bundles_post_ra>
